<compile_context>
chip_gen: v5e
topology: v5e:2x2
jax: 0.10.0
libtpu: 0.0.40
codegen_flags: <defaults>
</compile_context>

<pallas_src>
import functools

import jax
import jax.numpy as jnp
from jax.experimental import pallas as pl
from jax.experimental.pallas import tpu as pltpu

MODEL_DIM = 32
NUM_HEADS = 4
DIM_PER_HEAD = MODEL_DIM // NUM_HEADS
LN_EPS = 1e-5
LANE = 128  # TPU lane width; wq/wk/wv each get their own 128-lane column group


def _layer_norm(z, gamma, beta):
    mu = jnp.mean(z, axis=-1, keepdims=True)
    var = jnp.mean((z - mu) ** 2, axis=-1, keepdims=True)
    return (z - mu) * jax.lax.rsqrt(var + LN_EPS) * gamma + beta


def mhca_kernel(x_ref, wqkv_ref, wf_ref, blk_ref, valid_ref,
                g1_ref, b1_ref, g2_ref, b2_ref, out_ref, *, batch, seq):
    """Both directions, all batches and all heads in ONE step.

    x_ref    : (2R, D)     rows [0,R) = x1 tokens, rows [R,2R) = x2 tokens
    wqkv_ref : (D, 3*128)  [wq*dh^-0.5 | 0 | wk | 0 | wv | 0], 128-lane aligned
    wf_ref   : (D, D)      final projection
    blk_ref  : (H*S, D)    head block-diagonal mask (precomputed)
    valid_ref: (2R, C)     query-row -> partner kv-column-group mask (precomputed)
    g*/b*    : (1, D)      inner / outer LayerNorm params
    out_ref  : (2R, D)     rows [0,R) = output_1, rows [R,2R) = output_2
    """
    D, H = MODEL_DIM, NUM_HEADS
    B, S = batch, seq
    R = B * S
    G = 2 * B            # token groups, direction-major: [x1 b0, x1 b1, x2 b0, x2 b1]
    C = G * H * S        # expanded key/value rows: (group, head, key)

    x = x_ref[...]                                                   # (2R, D)

    # Fused Q/K/V projection: ONE MXU matmul for the 2R distinct tokens.
    # Output columns are 128-lane aligned, so each extraction below is a
    # lane-group select at offset 0 (no sub-vreg lane rotates).
    qkv = jnp.dot(x, wqkv_ref[...], preferred_element_type=jnp.float32)  # (2R, 3*128)
    q = qkv[:, 0:D]                          # already scaled by dh^-0.5 (folded into wq)
    k = qkv[:, LANE:LANE + D]
    v = qkv[:, 2 * LANE:2 * LANE + D]

    # Block-diagonal head expansion over (group, head, key) rows so ALL heads /
    # batches / directions are covered by a single 2-D matmul each.
    blk = blk_ref[...]                                               # (H*S, D)
    k3 = k.reshape(G, S, D)
    v3 = v.reshape(G, S, D)
    k_bd = (jnp.concatenate([k3] * H, axis=1) * blk).reshape(C, D)   # (C, D)
    v_bd = (jnp.concatenate([v3] * H, axis=1) * blk).reshape(C, D)   # (C, D)

    # scores[r, (g, h, key)] = <Q_h[r], K_h[g*S+key]> * dh^-0.5  (one matmul;
    # Mosaic may insert a single transpose of k_bd — XLU slot, cheap here).
    scores = jnp.einsum("rd,cd->rc", q, k_bd,
                        preferred_element_type=jnp.float32)          # (2R, C)

    # PyTorch nn.Softmax(dim=2) on (B, H, Sq, Sk) normalizes over the *query*
    # axis: softmax over the S query rows within each (direction, batch) group.
    s = scores.reshape(G, S, C)
    m = jnp.max(s, axis=1, keepdims=True)
    e = jnp.exp(s - m)
    p = e * pl.reciprocal(jnp.sum(e, axis=1, keepdims=True), approx=True)
    # Keep only each query group's partner columns (other modality, same batch).
    p = p.reshape(2 * R, C) * valid_ref[...]

    # Context lands directly in packed head-major lane layout (one matmul).
    ctx = jnp.dot(p, v_bd, preferred_element_type=jnp.float32)       # (2R, D)
    proj = jnp.dot(ctx, wf_ref[...], preferred_element_type=jnp.float32)

    inner = _layer_norm(x + proj, g1_ref[...], b1_ref[...])          # CrossAttention LN
    out_ref[...] = _layer_norm(x + inner, g2_ref[...], b2_ref[...])  # outer LN


def _make_masks(batch, seq):
    """Host-side constant masks (built once at parameter-prep time)."""
    H, dh, D = NUM_HEADS, DIM_PER_HEAD, MODEL_DIM
    G = 2 * batch
    # Head block-diagonal mask for the (group, head, key) row expansion.
    head_of_row = jnp.arange(H * seq) // seq
    head_of_col = jnp.arange(D) // dh
    blk = (head_of_row[:, None] == head_of_col[None, :]).astype(jnp.float32)   # (H*S, D)
    # Query row -> valid kv column-group mask (other modality, same batch).
    row_group = jnp.arange(2 * batch * seq) // seq                    # (2R,)
    col_group = jnp.arange(G * H * seq) // (H * seq)                  # (C,)
    partner = (row_group + batch) % G
    valid = (col_group[None, :] == partner[:, None]).astype(jnp.float32)       # (2R, C)
    return blk, valid


def prepare_params(params, batch, seq):
    """One-time parameter prep (outside the jitted forward): fold the attention
    scale into wq, lane-align the fused [Q|K|V] weight, build constant masks."""
    wq, wk, wv, wf, g1, b1, g2, b2 = params
    D = MODEL_DIM
    scale = DIM_PER_HEAD ** (-0.5)
    pad = jnp.zeros((D, LANE - D), jnp.float32)
    wqkv = jnp.concatenate([wq * scale, pad, wk, pad, wv, pad], axis=1)  # (D, 3*128)
    blk, valid = _make_masks(batch, seq)
    return (wqkv, wf, blk, valid, g1, b1, g2, b2)


@jax.jit
def multi_head_cross_attention(x1, x2, prep):
    wqkv, wf, blk, valid, g1, b1, g2, b2 = prep
    B, S, D = x1.shape
    R = B * S
    C = 2 * B * NUM_HEADS * S

    # Single (2R, D) activation slab: rows [0,R) = x1 tokens, [R,2R) = x2 tokens.
    x_all = jnp.concatenate([x1.reshape(R, D), x2.reshape(R, D)], axis=0)

    kernel = functools.partial(mhca_kernel, batch=B, seq=S)

    out = pl.pallas_call(
        kernel,
        out_shape=jax.ShapeDtypeStruct((2 * R, D), jnp.float32),
        grid=(1,),
        in_specs=[
            pl.BlockSpec((2 * R, D), lambda i: (0, 0)),
            pl.BlockSpec((D, 3 * LANE), lambda i: (0, 0)),
            pl.BlockSpec((D, D), lambda i: (0, 0)),
            pl.BlockSpec((NUM_HEADS * S, D), lambda i: (0, 0)),
            pl.BlockSpec((2 * R, C), lambda i: (0, 0)),
            pl.BlockSpec((1, D), lambda i: (0, 0)),
            pl.BlockSpec((1, D), lambda i: (0, 0)),
            pl.BlockSpec((1, D), lambda i: (0, 0)),
            pl.BlockSpec((1, D), lambda i: (0, 0)),
        ],
        out_specs=pl.BlockSpec((2 * R, D), lambda i: (0, 0)),
        compiler_params=pltpu.CompilerParams(
            dimension_semantics=("arbitrary",)),  # single step; no cross-TC split
    )(x_all, wqkv, wf, blk, valid, g1, b1, g2, b2)

    return out[:R].reshape(B, S, D), out[R:].reshape(B, S, D)


# ----------------------------- reference (pure JAX) -----------------------------
def _ref_cross_attention(xq, xkv, params):
    wq, wk, wv, wf, g1, b1, g2, b2 = params
    B, Sq, D = xq.shape
    q = (xq @ wq).reshape(B, Sq, NUM_HEADS, DIM_PER_HEAD).transpose(0, 2, 1, 3)
    k = (xkv @ wk).reshape(B, -1, NUM_HEADS, DIM_PER_HEAD).transpose(0, 2, 1, 3)
    v = (xkv @ wv).reshape(B, -1, NUM_HEADS, DIM_PER_HEAD).transpose(0, 2, 1, 3)
    attn = jnp.einsum("bhqd,bhkd->bhqk", q, k) * (DIM_PER_HEAD ** -0.5)
    attn = jax.nn.softmax(attn, axis=2)  # dim=2 of (B,H,Sq,Sk) => query axis
    ctx = jnp.einsum("bhqk,bhkd->bhqd", attn, v)
    ctx = ctx.transpose(0, 2, 1, 3).reshape(B, Sq, D)
    proj = ctx @ wf
    inner = _layer_norm(xq + proj, g1, b1)
    return _layer_norm(xq + inner, g2, b2)


def _make_params(key):
    ks = jax.random.split(key, 4)
    D = MODEL_DIM
    wq = jax.random.normal(ks[0], (D, D), jnp.float32) * 0.05
    wk = jax.random.normal(ks[1], (D, D), jnp.float32) * 0.05
    wv = jax.random.normal(ks[2], (D, D), jnp.float32) * 0.05
    wf = jax.random.normal(ks[3], (D, D), jnp.float32) * 0.05
    # LayerNorm default init (weight=1, bias=0), kept as (1, D) for the kernel
    g1 = jnp.ones((1, D), jnp.float32)
    b1 = jnp.zeros((1, D), jnp.float32)
    g2 = jnp.ones((1, D), jnp.float32)
    b2 = jnp.zeros((1, D), jnp.float32)
    return (wq, wk, wv, wf, g1, b1, g2, b2)


if __name__ == "__main__":
    key = jax.random.PRNGKey(0)
    k_p, k1, k2 = jax.random.split(key, 3)

    B, S = 2, 8
    x1 = jax.random.normal(k1, (B, S, MODEL_DIM), jnp.float32)
    x2 = jax.random.normal(k2, (B, S, MODEL_DIM), jnp.float32)
    params = _make_params(k_p)
    prep = prepare_params(params, B, S)      # one-time, outside the jitted forward

    out1, out2 = multi_head_cross_attention(x1, x2, prep)
    jax.block_until_ready((out1, out2))

    ref1 = _ref_cross_attention(x1, x2, params)
    ref2 = _ref_cross_attention(x2, x1, params)
    # Tolerance 1e-3: kernel uses the EUP approximate reciprocal for the
    # softmax denominator; outputs are LayerNormed (O(1)).
    assert jnp.allclose(out1, ref1, atol=1e-3, rtol=1e-3), "output_1 mismatch"
    assert jnp.allclose(out2, ref2, atol=1e-3, rtol=1e-3), "output_2 mismatch"

    print("KERNEL_OK")
</pallas_src>

<mosaic_0001>
module attributes {stable_mosaic.version = 11 : i64} {
  func.func @mhca_kernel(%arg0: i32, %arg1: memref<32x32xf32, #tpu.memory_space<vmem>>, %arg2: memref<32x384xf32, #tpu.memory_space<vmem>>, %arg3: memref<32x32xf32, #tpu.memory_space<vmem>>, %arg4: memref<32x32xf32, #tpu.memory_space<vmem>>, %arg5: memref<32x128xf32, #tpu.memory_space<vmem>>, %arg6: memref<1x32xf32, #tpu.memory_space<vmem>>, %arg7: memref<1x32xf32, #tpu.memory_space<vmem>>, %arg8: memref<1x32xf32, #tpu.memory_space<vmem>>, %arg9: memref<1x32xf32, #tpu.memory_space<vmem>>, %arg10: memref<32x32xf32, #tpu.memory_space<vmem>>) attributes {dimension_semantics = [#tpu.dimension_semantics<arbitrary>], iteration_bounds = array<i64: 1>, scalar_prefetch = 0 : i64, scratch_operands = 0 : i64, tpu.core_type = #tpu.core_type<tc>, window_params = [{pipeline_mode = #tpu.pipeline_mode<synchronous>, transform_indices = @transform_0, window_bounds = array<i64: 32, 32>}, {pipeline_mode = #tpu.pipeline_mode<synchronous>, transform_indices = @transform_1, window_bounds = array<i64: 32, 384>}, {pipeline_mode = #tpu.pipeline_mode<synchronous>, transform_indices = @transform_2, window_bounds = array<i64: 32, 32>}, {pipeline_mode = #tpu.pipeline_mode<synchronous>, transform_indices = @transform_3, window_bounds = array<i64: 32, 32>}, {pipeline_mode = #tpu.pipeline_mode<synchronous>, transform_indices = @transform_4, window_bounds = array<i64: 32, 128>}, {pipeline_mode = #tpu.pipeline_mode<synchronous>, transform_indices = @transform_5, window_bounds = array<i64: 1, 32>}, {pipeline_mode = #tpu.pipeline_mode<synchronous>, transform_indices = @transform_6, window_bounds = array<i64: 1, 32>}, {pipeline_mode = #tpu.pipeline_mode<synchronous>, transform_indices = @transform_7, window_bounds = array<i64: 1, 32>}, {pipeline_mode = #tpu.pipeline_mode<synchronous>, transform_indices = @transform_8, window_bounds = array<i64: 1, 32>}, {pipeline_mode = #tpu.pipeline_mode<synchronous>, transform_indices = @transform_9, window_bounds = array<i64: 32, 32>}]} {
    %c0 = arith.constant 0 : index
    %c0_0 = arith.constant 0 : index
    %0 = vector.load %arg1[%c0, %c0_0] : memref<32x32xf32, #tpu.memory_space<vmem>>, vector<32x32xf32>
    %c0_1 = arith.constant 0 : index
    %c0_2 = arith.constant 0 : index
    %1 = vector.load %arg2[%c0_1, %c0_2] : memref<32x384xf32, #tpu.memory_space<vmem>>, vector<32x384xf32>
    %cst = arith.constant dense<0.000000e+00> : vector<32x384xf32>
    %2 = tpu.matmul %0, %1, %cst {dimension_numbers = #tpu.dot_dimension_numbers<[1], [0], [0], [1], [0, 0, 1, 1], [], []>} : vector<32x32xf32>, vector<32x384xf32>, vector<32x384xf32> -> vector<32x384xf32>
    %3 = vector.extract_strided_slice %2 {offsets = [0, 0], sizes = [32, 32], strides = [1, 1]} : vector<32x384xf32> to vector<32x32xf32>
    %4 = vector.extract_strided_slice %2 {offsets = [0, 128], sizes = [32, 32], strides = [1, 1]} : vector<32x384xf32> to vector<32x32xf32>
    %5 = vector.extract_strided_slice %2 {offsets = [0, 256], sizes = [32, 32], strides = [1, 1]} : vector<32x384xf32> to vector<32x32xf32>
    %c0_3 = arith.constant 0 : index
    %c0_4 = arith.constant 0 : index
    %6 = vector.load %arg4[%c0_3, %c0_4] : memref<32x32xf32, #tpu.memory_space<vmem>>, vector<32x32xf32>
    %7 = vector.shape_cast %4 : vector<32x32xf32> to vector<4x8x32xf32>
    %8 = vector.shape_cast %5 : vector<32x32xf32> to vector<4x8x32xf32>
    %9 = tpu.concatenate %7, %7, %7, %7 in 1 : vector<4x8x32xf32>, vector<4x8x32xf32>, vector<4x8x32xf32>, vector<4x8x32xf32> -> vector<4x32x32xf32>
    %10 = vector.shape_cast %6 : vector<32x32xf32> to vector<1x32x32xf32>
    %11 = vector.broadcast %10 : vector<1x32x32xf32> to vector<4x32x32xf32>
    %12 = arith.mulf %9, %11 : vector<4x32x32xf32>
    %13 = vector.shape_cast %12 : vector<4x32x32xf32> to vector<128x32xf32>
    %14 = tpu.concatenate %8, %8, %8, %8 in 1 : vector<4x8x32xf32>, vector<4x8x32xf32>, vector<4x8x32xf32>, vector<4x8x32xf32> -> vector<4x32x32xf32>
    %15 = vector.shape_cast %6 : vector<32x32xf32> to vector<1x32x32xf32>
    %16 = vector.broadcast %15 : vector<1x32x32xf32> to vector<4x32x32xf32>
    %17 = arith.mulf %14, %16 : vector<4x32x32xf32>
    %18 = vector.shape_cast %17 : vector<4x32x32xf32> to vector<128x32xf32>
    "tpu.trace_start"() <{level = 10 : i32, message = "rd,cd->rc"}> : () -> ()
    %cst_5 = arith.constant dense<0.000000e+00> : vector<32x128xf32>
    %19 = tpu.matmul %3, %13, %cst_5 {dimension_numbers = #tpu.dot_dimension_numbers<[1], [1], [0], [0], [0, 0, 1, 0], [], []>} : vector<32x32xf32>, vector<128x32xf32>, vector<32x128xf32> -> vector<32x128xf32>
    "tpu.trace_stop"() : () -> ()
    %20 = vector.shape_cast %19 : vector<32x128xf32> to vector<4x8x128xf32>
    %cst_6 = arith.constant dense<0xFF800000> : vector<4x128xf32>
    %21 = vector.multi_reduction <maximumf>, %20, %cst_6 [1] : vector<4x8x128xf32> to vector<4x128xf32>
    %22 = vector.shape_cast %21 : vector<4x128xf32> to vector<4x1x128xf32>
    %23 = vector.broadcast %22 : vector<4x1x128xf32> to vector<4x8x128xf32>
    %24 = arith.subf %20, %23 : vector<4x8x128xf32>
    %25 = math.exp %24 : vector<4x8x128xf32>
    %cst_7 = arith.constant dense<0.000000e+00> : vector<4x128xf32>
    %26 = vector.multi_reduction <add>, %25, %cst_7 [1] : vector<4x8x128xf32> to vector<4x128xf32>
    %27 = vector.shape_cast %26 : vector<4x128xf32> to vector<4x1x128xf32>
    %28 = tpu.reciprocal %27 {approx = true} : vector<4x1x128xf32> -> vector<4x1x128xf32>
    %29 = vector.broadcast %28 : vector<4x1x128xf32> to vector<4x8x128xf32>
    %30 = arith.mulf %25, %29 : vector<4x8x128xf32>
    %31 = vector.shape_cast %30 : vector<4x8x128xf32> to vector<32x128xf32>
    %c0_8 = arith.constant 0 : index
    %c0_9 = arith.constant 0 : index
    %32 = vector.load %arg5[%c0_8, %c0_9] : memref<32x128xf32, #tpu.memory_space<vmem>>, vector<32x128xf32>
    %33 = arith.mulf %31, %32 : vector<32x128xf32>
    %cst_10 = arith.constant dense<0.000000e+00> : vector<32x32xf32>
    %34 = tpu.matmul %33, %18, %cst_10 {dimension_numbers = #tpu.dot_dimension_numbers<[1], [0], [0], [1], [0, 0, 1, 1], [], []>} : vector<32x128xf32>, vector<128x32xf32>, vector<32x32xf32> -> vector<32x32xf32>
    %c0_11 = arith.constant 0 : index
    %c0_12 = arith.constant 0 : index
    %35 = vector.load %arg3[%c0_11, %c0_12] : memref<32x32xf32, #tpu.memory_space<vmem>>, vector<32x32xf32>
    %cst_13 = arith.constant dense<0.000000e+00> : vector<32x32xf32>
    %36 = tpu.matmul %34, %35, %cst_13 {dimension_numbers = #tpu.dot_dimension_numbers<[1], [0], [0], [1], [0, 0, 1, 1], [], []>} : vector<32x32xf32>, vector<32x32xf32>, vector<32x32xf32> -> vector<32x32xf32>
    %37 = arith.addf %0, %36 : vector<32x32xf32>
    %c0_14 = arith.constant 0 : index
    %c0_15 = arith.constant 0 : index
    %38 = vector.load %arg6[%c0_14, %c0_15] : memref<1x32xf32, #tpu.memory_space<vmem>>, vector<1x32xf32>
    %c0_16 = arith.constant 0 : index
    %c0_17 = arith.constant 0 : index
    %39 = vector.load %arg7[%c0_16, %c0_17] : memref<1x32xf32, #tpu.memory_space<vmem>>, vector<1x32xf32>
    %cst_18 = arith.constant dense<0.000000e+00> : vector<32xf32>
    %40 = vector.multi_reduction <add>, %37, %cst_18 [1] : vector<32x32xf32> to vector<32xf32>
    %41 = vector.shape_cast %40 : vector<32xf32> to vector<32x1xf32>
    %cst_19 = arith.constant 3.200000e+01 : f32
    %42 = vector.broadcast %cst_19 : f32 to vector<32x1xf32>
    %43 = arith.divf %41, %42 : vector<32x1xf32>
    %44 = vector.broadcast %43 : vector<32x1xf32> to vector<32x32xf32>
    %45 = arith.subf %37, %44 : vector<32x32xf32>
    %46 = arith.mulf %45, %45 : vector<32x32xf32>
    %cst_20 = arith.constant dense<0.000000e+00> : vector<32xf32>
    %47 = vector.multi_reduction <add>, %46, %cst_20 [1] : vector<32x32xf32> to vector<32xf32>
    %48 = vector.shape_cast %47 : vector<32xf32> to vector<32x1xf32>
    %cst_21 = arith.constant 3.200000e+01 : f32
    %49 = vector.broadcast %cst_21 : f32 to vector<32x1xf32>
    %50 = arith.divf %48, %49 : vector<32x1xf32>
    %51 = vector.broadcast %43 : vector<32x1xf32> to vector<32x32xf32>
    %52 = arith.subf %37, %51 : vector<32x32xf32>
    %cst_22 = arith.constant 9.99999974E-6 : f32
    %53 = vector.broadcast %cst_22 : f32 to vector<32x1xf32>
    %54 = arith.addf %50, %53 : vector<32x1xf32>
    %55 = math.rsqrt %54 : vector<32x1xf32>
    %56 = vector.broadcast %55 : vector<32x1xf32> to vector<32x32xf32>
    %57 = arith.mulf %52, %56 : vector<32x32xf32>
    %58 = vector.broadcast %38 : vector<1x32xf32> to vector<32x32xf32>
    %59 = arith.mulf %57, %58 : vector<32x32xf32>
    %60 = vector.broadcast %39 : vector<1x32xf32> to vector<32x32xf32>
    %61 = arith.addf %59, %60 : vector<32x32xf32>
    %62 = arith.addf %0, %61 : vector<32x32xf32>
    %c0_23 = arith.constant 0 : index
    %c0_24 = arith.constant 0 : index
    %63 = vector.load %arg8[%c0_23, %c0_24] : memref<1x32xf32, #tpu.memory_space<vmem>>, vector<1x32xf32>
    %c0_25 = arith.constant 0 : index
    %c0_26 = arith.constant 0 : index
    %64 = vector.load %arg9[%c0_25, %c0_26] : memref<1x32xf32, #tpu.memory_space<vmem>>, vector<1x32xf32>
    %cst_27 = arith.constant dense<0.000000e+00> : vector<32xf32>
    %65 = vector.multi_reduction <add>, %62, %cst_27 [1] : vector<32x32xf32> to vector<32xf32>
    %66 = vector.shape_cast %65 : vector<32xf32> to vector<32x1xf32>
    %cst_28 = arith.constant 3.200000e+01 : f32
    %67 = vector.broadcast %cst_28 : f32 to vector<32x1xf32>
    %68 = arith.divf %66, %67 : vector<32x1xf32>
    %69 = vector.broadcast %68 : vector<32x1xf32> to vector<32x32xf32>
    %70 = arith.subf %62, %69 : vector<32x32xf32>
    %71 = arith.mulf %70, %70 : vector<32x32xf32>
    %cst_29 = arith.constant dense<0.000000e+00> : vector<32xf32>
    %72 = vector.multi_reduction <add>, %71, %cst_29 [1] : vector<32x32xf32> to vector<32xf32>
    %73 = vector.shape_cast %72 : vector<32xf32> to vector<32x1xf32>
    %cst_30 = arith.constant 3.200000e+01 : f32
    %74 = vector.broadcast %cst_30 : f32 to vector<32x1xf32>
    %75 = arith.divf %73, %74 : vector<32x1xf32>
    %76 = vector.broadcast %68 : vector<32x1xf32> to vector<32x32xf32>
    %77 = arith.subf %62, %76 : vector<32x32xf32>
    %cst_31 = arith.constant 9.99999974E-6 : f32
    %78 = vector.broadcast %cst_31 : f32 to vector<32x1xf32>
    %79 = arith.addf %75, %78 : vector<32x1xf32>
    %80 = math.rsqrt %79 : vector<32x1xf32>
    %81 = vector.broadcast %80 : vector<32x1xf32> to vector<32x32xf32>
    %82 = arith.mulf %77, %81 : vector<32x32xf32>
    %83 = vector.broadcast %63 : vector<1x32xf32> to vector<32x32xf32>
    %84 = arith.mulf %82, %83 : vector<32x32xf32>
    %85 = vector.broadcast %64 : vector<1x32xf32> to vector<32x32xf32>
    %86 = arith.addf %84, %85 : vector<32x32xf32>
    %c0_32 = arith.constant 0 : index
    %c0_33 = arith.constant 0 : index
    %87 = vector.load %arg10[%c0_32, %c0_33] : memref<32x32xf32, #tpu.memory_space<vmem>>, vector<32x32xf32>
    tpu.vector_store %arg10[%c0_32, %c0_33], %86 {strides = array<i32>} : memref<32x32xf32, #tpu.memory_space<vmem>>, vector<32x32xf32>,
    return
  }
  func.func @transform_0(%arg0: i32) -> (i32, i32) {
    %c0_i32 = arith.constant 0 : i32
    %c0_i32_0 = arith.constant 0 : i32
    %c0_i32_1 = arith.constant 0 : i32
    return %c0_i32, %c0_i32_0 : i32, i32
  }
  func.func @transform_1(%arg0: i32) -> (i32, i32) {
    %c0_i32 = arith.constant 0 : i32
    %c0_i32_0 = arith.constant 0 : i32
    %c0_i32_1 = arith.constant 0 : i32
    return %c0_i32, %c0_i32_0 : i32, i32
  }
  func.func @transform_2(%arg0: i32) -> (i32, i32) {
    %c0_i32 = arith.constant 0 : i32
    %c0_i32_0 = arith.constant 0 : i32
    %c0_i32_1 = arith.constant 0 : i32
    return %c0_i32, %c0_i32_0 : i32, i32
  }
  func.func @transform_3(%arg0: i32) -> (i32, i32) {
    %c0_i32 = arith.constant 0 : i32
    %c0_i32_0 = arith.constant 0 : i32
    %c0_i32_1 = arith.constant 0 : i32
    return %c0_i32, %c0_i32_0 : i32, i32
  }
  func.func @transform_4(%arg0: i32) -> (i32, i32) {
    %c0_i32 = arith.constant 0 : i32
    %c0_i32_0 = arith.constant 0 : i32
    %c0_i32_1 = arith.constant 0 : i32
    return %c0_i32, %c0_i32_0 : i32, i32
  }
  func.func @transform_5(%arg0: i32) -> (i32, i32) {
    %c0_i32 = arith.constant 0 : i32
    %c0_i32_0 = arith.constant 0 : i32
    %c0_i32_1 = arith.constant 0 : i32
    return %c0_i32, %c0_i32_0 : i32, i32
  }
  func.func @transform_6(%arg0: i32) -> (i32, i32) {
    %c0_i32 = arith.constant 0 : i32
    %c0_i32_0 = arith.constant 0 : i32
    %c0_i32_1 = arith.constant 0 : i32
    return %c0_i32, %c0_i32_0 : i32, i32
  }
  func.func @transform_7(%arg0: i32) -> (i32, i32) {
    %c0_i32 = arith.constant 0 : i32
    %c0_i32_0 = arith.constant 0 : i32
    %c0_i32_1 = arith.constant 0 : i32
    return %c0_i32, %c0_i32_0 : i32, i32
  }
  func.func @transform_8(%arg0: i32) -> (i32, i32) {
    %c0_i32 = arith.constant 0 : i32
    %c0_i32_0 = arith.constant 0 : i32
    %c0_i32_1 = arith.constant 0 : i32
    return %c0_i32, %c0_i32_0 : i32, i32
  }
  func.func @transform_9(%arg0: i32) -> (i32, i32) {
    %c0_i32 = arith.constant 0 : i32
    %c0_i32_0 = arith.constant 0 : i32
    %c0_i32_1 = arith.constant 0 : i32
    return %c0_i32, %c0_i32_0 : i32, i32
  }
}

</mosaic_0001>

<bundles_post_ra>
// kernel: multi_head_cross_attention.1
= control target key start
LH: loop header
LB: loop body
LE: loop exit
PB: predicated region body
PF: predicated region fallthrough
CT: control target
= control target key end

     0   :  { %14 = vsyncpa [#allocation3], 0  ;;  %s1138_s0 = inlined_call_operand.vmem [shape: f32[32,32], index: 0, kind: input, shape index: {}]   ;;  %s1139_s1 = inlined_call_operand.hbm [shape: f32[32,384], index: 1, kind: input, shape index: {}]   ;;  %s1140_s2 = inlined_call_operand.vmem [shape: f32[32,32], index: 2, kind: input, shape index: {}]   ;;  %s1141_s3 = inlined_call_operand.vmem [shape: f32[32,32], index: 3, kind: input, shape index: {}]   ;;  %s1142_s4 = inlined_call_operand.hbm [shape: f32[32,128], index: 4, kind: input, shape index: {}]   ;;  %s1143_s5 = inlined_call_operand.vmem [shape: f32[1,32], index: 5, kind: input, shape index: {}]   ;;  %s1144_s6 = inlined_call_operand.vmem [shape: f32[1,32], index: 6, kind: input, shape index: {}]   ;;  %s1145_s7 = inlined_call_operand.vmem [shape: f32[1,32], index: 7, kind: input, shape index: {}]   ;;  %s1146_s8 = inlined_call_operand.vmem [shape: f32[1,32], index: 8, kind: input, shape index: {}]   ;;  %s1147_s9 = inlined_call_operand.vmem [shape: f32[32,32], index: 9, kind: output, shape index: {}]  }
   0x1   :  { %s22_s11 = sshll.u32 %s1139_s1, 4  ;;  %s23_s11 = int_to_ptr.hbm [resolvable:$true] %s22_s11 }
   0x2   :  { %15 = vsyncpa [#allocation5], 0  ;;  %s837_s12 = smov [#allocation2]   ;;  %s39_s16 = sshll.u32 %s1142_s4, 4  ;;  %s40_s16 = int_to_ptr.hbm [resolvable:$true] %s39_s16 }
   0x3   :  { %s24_s13 = sshll.u32 %s837_s12, 4  ;;  %s838_s17 = smov 384   ;;  %s25_s13 = int_to_ptr.vmem [resolvable:$true] %s24_s13 }
   0x4   :  { %s839_s18 = smov 24   ;;  %s840_s19 = smov [#allocation4]  }
   0x5   :  { %30 = dma.hbm_to_vmem [thread:$0]  %s23_s11, 1536, %s25_s13, [#allocation3], %s838_s17, %s838_s17, %s839_s18  }
   0x6   :  { %s41_s20 = sshll.u32 %s840_s19, 4  ;;  %s841_s21 = smov 128   ;;  %s42_s20 = int_to_ptr.vmem [resolvable:$true] %s41_s20 }
   0x7   :  { %s842_s22 = smov 8  }
   0x8   :  { %47 = dma.hbm_to_vmem [thread:$0]  %s40_s16, 512, %s42_s20, [#allocation5], %s841_s21, %s841_s21, %s842_s22  }
   0x9   :  { %833 = dma.done.wait [#allocation3], 1536  }
   0xa   :  { %834 = vsyncadd [#allocation3], 4294965760 }
   0xb   :  { %835 = dma.done.wait [#allocation5], 512  }
   0xc   :  { %836 = vsyncadd [#allocation5], 4294966784  ;;  %v78_v0 = vld [vmem:[#allocation2 + $0x50] sm:$0xff]  ;;  %v75_v1 = vld [vmem:[#allocation2 + $0x38] sm:$0xff]  ;;  %vm80_vm0 = vcmask 261120  }
   0xd   :  { %134 = vmatpush.msra.mxu1 %v78_v0  ;;  %v72_v2 = vld [vmem:[#allocation2 + $0x20] sm:$0xff]  ;;  %v69_v3 = vld [vmem:[#allocation2 + $0x8] sm:$0xff]  ;;  %v74_v6 = vld [vmem:[#allocation2 + $0x30] sm:$0xff] }
   0xe   :  { %v77_v4 = vld [vmem:[#allocation2 + $0x48] sm:$0xff]  ;;  %v903_v5 = vld [vmem:[%s1138_s0] sm:$0xff]  ;;  %v71_v7 = vld [vmem:[#allocation2 + $0x18] sm:$0xff] }
   0xf   :  { %135 = vmatpush.msra.mxu1 %v75_v1  ;;  %105 = vmatpush.msra.mxu0 %v77_v4  ;;  %v79_v8 = vld [vmem:[#allocation2 + $0x58] sm:$0xff]  ;;  %v76_v9 = vld [vmem:[#allocation2 + $0x40] sm:$0xff]  ;;  %v912_v11 = vld [vmem:[%s1138_s0 + $0x8] sm:$0xff] }
  0x10   :  { %v68_v10 = vld [vmem:[#allocation2] sm:$0xff]  ;;  %163 = vmatpush.msra.mxu2 %v79_v8  ;;  %v921_v12 = vld [vmem:[%s1138_s0 + $0x10] sm:$0xff]  ;;  %v930_v13 = vld [vmem:[%s1138_s0 + $0x18] sm:$0xff] }
  0x11   :  { %136 = vmatpush.msra.mxu1 %v72_v2  ;;  %106 = vmatpush.msra.mxu0 %v74_v6  ;;  %v73_v14 = vld [vmem:[#allocation2 + $0x28] sm:$0xff]  ;;  %v70_v15 = vld [vmem:[#allocation2 + $0x10] sm:$0xff]  ;;  %v947_v20 = vld [vmem:[%s1141_s3 + $0x18] sm:$0xff] }
  0x12   :  { %164 = vmatpush.msra.mxu2 %v76_v9  ;;  %v955_v22 = vld [vmem:[%s1141_s3 + $0x10] sm:$0xff]  ;;  %v963_v24 = vld [vmem:[%s1141_s3 + $0x8] sm:$0xff]  ;;  %v971_v26 = vld [vmem:[%s1141_s3] sm:$0xff] }
  0x13   :  { %137 = vmatpush.msra.mxu1 %v69_v3  ;;  %107 = vmatpush.msra.mxu0 %v71_v7 }
  0x14   :  { %692 = vmatmul.msk.f32.vlgmr.msra.gmra.mxu1 %vm80_vm0, %v903_v5  ;;  %165 = vmatpush.msra.mxu2 %v73_v14 }
  0x15   :  { %108 = vmatpush.msra.mxu0 %v68_v10 }
  0x16   :  { %688 = vmatmul.msk.f32.vlgmr.msra.gmra.mxu0 %vm80_vm0, %v903_v5  ;;  %166 = vmatpush.msra.mxu2 %v70_v15 }
  0x17   :  { %696 = vmatmul.msk.f32.vlgmr.msra.gmra.mxu2 %vm80_vm0, %v903_v5 }
  0x1c   :  { %693 = vmatmul.msk.f32.gmra.mxu1 %vm80_vm0, %v912_v11 }
  0x1e   :  { %689 = vmatmul.msk.f32.gmra.mxu0 %vm80_vm0, %v912_v11 }
  0x1f   :  { %697 = vmatmul.msk.f32.gmra.mxu2 %vm80_vm0, %v912_v11 }
  0x24   :  { %694 = vmatmul.msk.f32.gmra.mxu1 %vm80_vm0, %v921_v12 }
  0x26   :  { %690 = vmatmul.msk.f32.gmra.mxu0 %vm80_vm0, %v921_v12 }
  0x27   :  { %698 = vmatmul.msk.f32.gmra.mxu2 %vm80_vm0, %v921_v12 }
  0x2c   :  { %695 = vmatmul.msk.f32.gmra.mxu1 %vm80_vm0, %v930_v13 }
  0x2e   :  { %691 = vmatmul.msk.f32.gmra.mxu0 %vm80_vm0, %v930_v13 }
  0x2f   :  { %699 = vmatmul.msk.f32.gmra.mxu2 %vm80_vm0, %v930_v13 }
  0x91   :  { %v139_v16 = vpop.f32.mrf.mxu1 }
  0x92   :  { %v187_v37 = vmul.f32 %v947_v20, %v139_v16  ;;  %v186_v39 = vmul.f32 %v955_v22, %v139_v16  ;;  %v185_v40 = vmul.f32 %v963_v24, %v139_v16  ;;  %v184_v41 = vmul.f32 %v971_v26, %v139_v16 }
  0x93   :  { %v110_v35 = vpop.f32.mrf.mxu0 }
  0x99   :  { %v142_v17 = vpop.f32.mrf.mxu1 }
  0x9a   :  { %v191_v32 = vmul.f32 %v947_v20, %v142_v17  ;;  %v190_v33 = vmul.f32 %v955_v22, %v142_v17  ;;  %v189_v34 = vmul.f32 %v963_v24, %v142_v17  ;;  %v188_v36 = vmul.f32 %v971_v26, %v142_v17  ;;  %v168_v44 = vpop.f32.mrf.mxu2 }
  0x9b   :  { %v113_v38 = vpop.f32.mrf.mxu0  ;;  %v203_v60 = vmul.f32 %v947_v20, %v168_v44  ;;  %v202_v61 = vmul.f32 %v955_v22, %v168_v44  ;;  %v201_v62 = vmul.f32 %v963_v24, %v168_v44  ;;  %v200_v63 = vmul.f32 %v971_v26, %v168_v44 }
  0xa1   :  { %v145_v18 = vpop.f32.mrf.mxu1 }
  0xa2   :  { %v195_v28 = vmul.f32 %v947_v20, %v145_v18  ;;  %v194_v29 = vmul.f32 %v955_v22, %v145_v18  ;;  %v193_v30 = vmul.f32 %v963_v24, %v145_v18  ;;  %v192_v31 = vmul.f32 %v971_v26, %v145_v18  ;;  %v171_v45 = vpop.f32.mrf.mxu2 }
  0xa3   :  { %v116_v42 = vpop.f32.mrf.mxu0  ;;  %v207_v56 = vmul.f32 %v947_v20, %v171_v45  ;;  %v206_v57 = vmul.f32 %v955_v22, %v171_v45  ;;  %v205_v58 = vmul.f32 %v963_v24, %v171_v45  ;;  %v204_v59 = vmul.f32 %v971_v26, %v171_v45 }
  0xa9   :  { %v148_v19 = vpop.f32.mrf.mxu1 }
  0xaa   :  { %v199_v21 = vmul.f32 %v947_v20, %v148_v19  ;;  %v198_v23 = vmul.f32 %v955_v22, %v148_v19  ;;  %v197_v25 = vmul.f32 %v963_v24, %v148_v19  ;;  %v196_v27 = vmul.f32 %v971_v26, %v148_v19  ;;  %v174_v46 = vpop.f32.mrf.mxu2 }
  0xab   :  { %v119_v43 = vpop.f32.mrf.mxu0  ;;  %v211_v52 = vmul.f32 %v947_v20, %v174_v46  ;;  %v210_v53 = vmul.f32 %v955_v22, %v174_v46  ;;  %v209_v54 = vmul.f32 %v963_v24, %v174_v46  ;;  %v208_v55 = vmul.f32 %v971_v26, %v174_v46 }
  0xac   :  { %700 = vmatpush.xpose.msk.msrb.mxu2 %vm80_vm0, %v199_v21  ;;  %724 = vmatpush.xpose.msk.msra.mxu3 %vm80_vm0, %v199_v21 }
  0xb0   :  { %701 = vmatpush.xpose.msk.msrb.mxu2 %vm80_vm0, %v198_v23  ;;  %725 = vmatpush.xpose.msk.msra.mxu3 %vm80_vm0, %v198_v23 }
  0xb2   :  { %v177_v47 = vpop.f32.mrf.mxu2 }
  0xb3   :  { %v215_v48 = vmul.f32 %v947_v20, %v177_v47  ;;  %v214_v49 = vmul.f32 %v955_v22, %v177_v47  ;;  %v213_v50 = vmul.f32 %v963_v24, %v177_v47  ;;  %v212_v51 = vmul.f32 %v971_v26, %v177_v47 }
  0xb4   :  { %702 = vmatpush.xpose.msk.msrb.mxu2 %vm80_vm0, %v197_v25  ;;  %726 = vmatpush.xpose.msk.msra.mxu3 %vm80_vm0, %v197_v25 }
  0xb5   :  { %381 = vmatpush.msrb.mxu0 %v215_v48 }
  0xb7   :  { %382 = vmatpush.msrb.mxu0 %v214_v49 }
  0xb8   :  { %703 = vmatpush.xpose.msk.msrb.mxu2 %vm80_vm0, %v196_v27  ;;  %727 = vmatpush.xpose.msk.msra.mxu3 %vm80_vm0, %v196_v27 }
  0xb9   :  { %383 = vmatpush.msrb.mxu0 %v213_v50 }
  0xbb   :  { %384 = vmatpush.msrb.mxu0 %v212_v51 }
  0xbc   :  { %704 = vmatpush.xpose.msk.msrb.mxu2 %vm80_vm0, %v195_v28  ;;  %728 = vmatpush.xpose.msk.msra.mxu3 %vm80_vm0, %v195_v28 }
  0xbd   :  { %385 = vmatpush.msrb.mxu0 %v211_v52 }
  0xbf   :  { %386 = vmatpush.msrb.mxu0 %v210_v53 }
  0xc0   :  { %705 = vmatpush.xpose.msk.msrb.mxu2 %vm80_vm0, %v194_v29  ;;  %729 = vmatpush.xpose.msk.msra.mxu3 %vm80_vm0, %v194_v29 }
  0xc1   :  { %387 = vmatpush.msrb.mxu0 %v209_v54 }
  0xc3   :  { %388 = vmatpush.msrb.mxu0 %v208_v55 }
  0xc4   :  { %706 = vmatpush.xpose.msk.msrb.mxu2 %vm80_vm0, %v193_v30  ;;  %730 = vmatpush.xpose.msk.msra.mxu3 %vm80_vm0, %v193_v30 }
  0xc5   :  { %389 = vmatpush.msrb.mxu0 %v207_v56 }
  0xc7   :  { %390 = vmatpush.msrb.mxu0 %v206_v57 }
  0xc8   :  { %707 = vmatpush.xpose.msk.msrb.mxu2 %vm80_vm0, %v192_v31  ;;  %731 = vmatpush.xpose.msk.msra.mxu3 %vm80_vm0, %v192_v31 }
  0xc9   :  { %391 = vmatpush.msrb.mxu0 %v205_v58 }
  0xcb   :  { %392 = vmatpush.msrb.mxu0 %v204_v59 }
  0xcc   :  { %708 = vmatpush.xpose.msk.msrb.mxu2 %vm80_vm0, %v191_v32  ;;  %732 = vmatpush.xpose.msk.msra.mxu3 %vm80_vm0, %v191_v32 }
  0xcd   :  { %393 = vmatpush.msrb.mxu0 %v203_v60  ;;  %v413_v60 = vld [vmem:[%s1140_s2 + $0x18] sm:$0xff] }
  0xce   :  { %438 = vmatpush.msrb.mxu1 %v413_v60 }
  0xcf   :  { %394 = vmatpush.msrb.mxu0 %v202_v61  ;;  %v412_v61 = vld [vmem:[%s1140_s2 + $0x10] sm:$0xff] }
  0xd0   :  { %709 = vmatpush.xpose.msk.msrb.mxu2 %vm80_vm0, %v190_v33  ;;  %733 = vmatpush.xpose.msk.msra.mxu3 %vm80_vm0, %v190_v33 }
  0xd1   :  { %395 = vmatpush.msrb.mxu0 %v201_v62  ;;  %439 = vmatpush.msrb.mxu1 %v412_v61 }
  0xd3   :  { %396 = vmatpush.msrb.mxu0 %v200_v63 }
  0xd4   :  { %710 = vmatpush.xpose.msk.msrb.mxu2 %vm80_vm0, %v189_v34  ;;  %734 = vmatpush.xpose.msk.msra.mxu3 %vm80_vm0, %v189_v34 }
  0xd8   :  { %711 = vmatpush.xpose.msk.msrb.mxu2 %vm80_vm0, %v188_v36  ;;  %735 = vmatpush.xpose.msk.msra.mxu3 %vm80_vm0, %v188_v36 }
  0xdc   :  { %712 = vmatpush.xpose.msk.msrb.mxu2 %vm80_vm0, %v187_v37  ;;  %736 = vmatpush.xpose.msk.msra.mxu3 %vm80_vm0, %v187_v37 }
  0xe0   :  { %713 = vmatpush.xpose.msk.msrb.mxu2 %vm80_vm0, %v186_v39  ;;  %737 = vmatpush.xpose.msk.msra.mxu3 %vm80_vm0, %v186_v39 }
  0xe4   :  { %714 = vmatpush.xpose.msk.msrb.mxu2 %vm80_vm0, %v185_v40  ;;  %738 = vmatpush.xpose.msk.msra.mxu3 %vm80_vm0, %v185_v40 }
  0xe8   :  { %715 = vmatpush.xpose.msk.msrb.mxu2 %vm80_vm0, %v184_v41  ;;  %739 = vmatpush.xpose.msk.msra.mxu3 %vm80_vm0, %v184_v41 }
  0xeb   :  { %716 = vmatmul.msk.f32.vlgmr.msrb.gmra.mxu2 %vm80_vm0, %v110_v35  ;;  %718 = vmatmul.msk.f32.vlgmr.msra.gmra.mxu3 %vm80_vm0, %v116_v42 }
  0xf3   :  { %717 = vmatmul.msk.f32.gmra.mxu2 %vm80_vm0, %v113_v38  ;;  %719 = vmatmul.msk.f32.gmra.mxu3 %vm80_vm0, %v119_v43 }
 0x16e   :  { %v293_v0 = vpop.f32.mrf.mxu2  ;;  %v299_v1 = vpop.f32.mrf.mxu3 }
 0x16f   :  { %v305_v2 = vrot.slane %v293_v0, 4  ;;  %v317_v3 = vrot.slane %v299_v1, 4 }
 0x171   :  { %v306_v4 = vmax.f32 %v293_v0, %v305_v2  ;;  %v318_v6 = vmax.f32 %v299_v1, %v317_v3  ;;  %v373_v3 = vld [vmem:[#allocation4] sm:$0xff] }
 0x173   :  { %v307_v7 = vrot.slane %v306_v4, 2  ;;  %v319_v8 = vrot.slane %v318_v6, 2 }
 0x175   :  { %v308_v9 = vmax.f32 %v306_v4, %v307_v7  ;;  %v320_v10 = vmax.f32 %v318_v6, %v319_v8  ;;  %v410_v7 = vld [vmem:[%s1140_s2] sm:$0xff] }
 0x176   :  { %v296_v14 = vpop.f32.mrf.mxu2  ;;  %v302_v15 = vpop.f32.mrf.mxu3 }
 0x177   :  { %v309_v16 = vrot.slane %v308_v9, 1  ;;  %v321_v17 = vrot.slane %v320_v10, 1  ;;  %v311_v18 = vrot.slane %v296_v14, 4  ;;  %v323_v19 = vrot.slane %v302_v15, 4 }
 0x179   :  { %v310_v20 = vmax.f32 %v308_v9, %v309_v16  ;;  %v322_v21 = vmax.f32 %v320_v10, %v321_v17  ;;  %v312_v22 = vmax.f32 %v296_v14, %v311_v18  ;;  %v324_v23 = vmax.f32 %v302_v15, %v323_v19  ;;  %v374_v16 = vld [vmem:[#allocation4 + $0x8] sm:$0xff] }
 0x17b   :  { %v329_v24 = vsub.f32 %v293_v0, %v310_v20  ;;  %v331_v25 = vsub.f32 %v299_v1, %v322_v21  ;;  %v313_v26 = vrot.slane %v312_v22, 2  ;;  %v325_v27 = vrot.slane %v324_v23, 2  ;;  %v411_v1 = vld [vmem:[%s1140_s2 + $0x8] sm:$0xff] }
 0x17c   :  { %440 = vmatpush.msrb.mxu1 %v411_v1 }
 0x17d   :  { %v333_v28 = vmul.f32 1.442695, %v329_v24  ;;  %v337_v29 = vmul.f32 1.442695, %v331_v25  ;;  %v314_v30 = vmax.f32 %v312_v22, %v313_v26  ;;  %v326_v31 = vmax.f32 %v324_v23, %v325_v27  ;;  %v375_v22 = vld [vmem:[#allocation4 + $0x10] sm:$0xff]  ;;  %v376_v26 = vld [vmem:[#allocation4 + $0x18] sm:$0xff] }
 0x17e   :  { %441 = vmatpush.msrb.mxu1 %v410_v7 }
 0x17f   :  { %751 = vpow2.f32 %v333_v28  ;;  %v315_v32 = vrot.slane %v314_v30, 1  ;;  %v327_v33 = vrot.slane %v326_v31, 1 }
 0x180   :  { %753 = vpow2.f32 %v337_v29 }
 0x181   :  { %v316_v34 = vmax.f32 %v314_v30, %v315_v32  ;;  %v328_v35 = vmax.f32 %v326_v31, %v327_v33 }
 0x183   :  { %v330_v36 = vsub.f32 %v296_v14, %v316_v34  ;;  %v332_v37 = vsub.f32 %v302_v15, %v328_v35 }
 0x185   :  { %v752_v38 = vpop.eup %751  ;;  %v335_v39 = vmul.f32 1.442695, %v330_v36  ;;  %v339_v40 = vmul.f32 1.442695, %v332_v37 }
 0x186   :  { %v754_v41 = vpop.eup %753  ;;  %v341_v42 = vrot.slane %v752_v38, 4 }
 0x187   :  { %755 = vpow2.f32 %v335_v39  ;;  %v353_v43 = vrot.slane %v754_v41, 4 }
 0x188   :  { %757 = vpow2.f32 %v339_v40  ;;  %v342_v44 = vadd.f32 %v752_v38, %v341_v42 }
 0x189   :  { %v354_v46 = vadd.f32 %v754_v41, %v353_v43 }
 0x18a   :  { %v343_v45 = vrot.slane %v342_v44, 2 }
 0x18b   :  { %v355_v52 = vrot.slane %v354_v46, 2 }
 0x18c   :  { %v344_v47 = vadd.f32 %v343_v45, %v342_v44  ;;  %v843_v44 = vmov 32.0  }
 0x18d   :  { %v756_v48 = vpop.eup %755  ;;  %v356_v57 = vadd.f32 %v355_v52, %v354_v46 }
 0x18e   :  { %v758_v49 = vpop.eup %757  ;;  %v345_v50 = vrot.slane %v344_v47, 1  ;;  %v347_v51 = vrot.slane %v756_v48, 4 }
 0x18f   :  { %v359_v53 = vrot.slane %v758_v49, 4  ;;  %v357_v63 = vrot.slane %v356_v57, 1 }
 0x190   :  { %v346_v54 = vadd.f32 %v345_v50, %v344_v47  ;;  %v348_v55 = vadd.f32 %v756_v48, %v347_v51 }
 0x191   :  { %v360_v58 = vadd.f32 %v758_v49, %v359_v53  ;;  %v358_v8 = vadd.f32 %v357_v63, %v356_v57 }
 0x192   :  { %759 = vrcp.f32 %v346_v54  ;;  %v349_v56 = vrot.slane %v348_v55, 2 }
 0x193   :  { %v361_v0 = vrot.slane %v360_v58, 2 }
 0x194   :  { %v350_v59 = vadd.f32 %v349_v56, %v348_v55 }
 0x195   :  { %v362_v9 = vadd.f32 %v361_v0, %v360_v58 }
 0x196   :  { %v351_v62 = vrot.slane %v350_v59, 1 }
 0x197   :  { %v363_v14 = vrot.slane %v362_v9, 1 }
 0x198   :  { %v760_v2 = vpop.eup %759  ;;  %v352_v4 = vadd.f32 %v351_v62, %v350_v59 }
 0x199   :  { %v369_v6 = vmul.f32 %v760_v2, %v752_v38  ;;  %v364_v18 = vadd.f32 %v363_v14, %v362_v9 }
 0x19a   :  { %761 = vrcp.f32 %v352_v4 }
 0x19b   :  { %v377_v10 = vmul.f32 %v373_v3, %v369_v6  ;;  %763 = vrcp.f32 %v358_v8 }
 0x19c   :  { %765 = vrcp.f32 %v364_v18 }
 0x19d   :  { %397 = vmatmul.f32.vlgmr.msrb.gmra.mxu0 %v377_v10  ;;  %767 = vrcp.f32 %v843_v44 }
 0x1a0   :  { %v762_v15 = vpop.eup %761 }
 0x1a1   :  { %v370_v17 = vmul.f32 %v762_v15, %v756_v48  ;;  %v764_v20 = vpop.eup %763 }
 0x1a2   :  { %v371_v21 = vmul.f32 %v764_v20, %v754_v41  ;;  %v766_v24 = vpop.eup %765 }
 0x1a3   :  { %v378_v19 = vmul.f32 %v374_v16, %v370_v17  ;;  %v372_v25 = vmul.f32 %v766_v24, %v758_v49  ;;  %v768_v45 = vpop.eup %767 }
 0x1a4   :  { %v379_v23 = vmul.f32 %v375_v22, %v371_v21  ;;  %v474_v46 = vmul.f32 32.0, %v768_v45  ;;  %vm478_vm1 = vweird.f32 %v768_v45 }
 0x1a5   :  { %400 = vmatmul.f32.gmra.mxu0 %v378_v19  ;;  %v380_v27 = vmul.f32 %v376_v26, %v372_v25 }
 0x1a6   :  { %v475_v47 = vsub.f32 1.0, %v474_v46 }
 0x1a8   :  { %v476_v48 = vmul.f32 %v768_v45, %v475_v47 }
 0x1aa   :  { %v477_v49 = vadd.f32 %v768_v45, %v476_v48 }
 0x1ac   :  { %v1056_v50 = vsel %vm478_vm1, %v768_v45, %v477_v49 }
 0x1ad   :  { %403 = vmatmul.f32.gmra.mxu0 %v379_v23 }
 0x1b5   :  { %406 = vmatmul.f32.gmra.mxu0 %v380_v27 }
 0x21a   :  { %v398_v28 = vpop.f32.mrf.mxu0 }
 0x21b   :  { %720 = vmatmul.msk.f32.vlgmr.msrb.gmra.mxu1 %vm80_vm0, %v398_v28  ;;  %v747_v28 = vld [vmem:[%s1143_s5] ss:$0 sm:$0xff] }
 0x222   :  { %v401_v29 = vpop.f32.mrf.mxu0 }
 0x223   :  { %721 = vmatmul.msk.f32.gmra.mxu1 %vm80_vm0, %v401_v29 }
 0x22a   :  { %v404_v30 = vpop.f32.mrf.mxu0 }
 0x22b   :  { %722 = vmatmul.msk.f32.gmra.mxu1 %vm80_vm0, %v404_v30 }
 0x232   :  { %v407_v31 = vpop.f32.mrf.mxu0 }
 0x233   :  { %723 = vmatmul.msk.f32.gmra.mxu1 %vm80_vm0, %v407_v31 }
 0x298   :  { %v443_v32 = vpop.f32.mrf.mxu1 }
 0x299   :  { %v455_v33 = vadd.f32 %v443_v32, %v903_v5  ;;  %v748_v32 = vld [vmem:[%s1144_s6] ss:$0 sm:$0xff] }
 0x29b   :  { %v461_v34 = vsel %vm80_vm0, %v455_v33, 0.0 }
 0x29c   :  { %462 = vadd.xlane.f32.xlu0 %v461_v34 }
 0x2a0   :  { %v446_v35 = vpop.f32.mrf.mxu1 }
 0x2a1   :  { %v456_v36 = vadd.f32 %v446_v35, %v912_v11 }
 0x2a3   :  { %v464_v37 = vsel %vm80_vm0, %v456_v36, 0.0 }
 0x2a4   :  { %465 = vadd.xlane.f32.xlu0 %v464_v37 }
 0x2a8   :  { %v449_v38 = vpop.f32.mrf.mxu1 }
 0x2a9   :  { %v457_v39 = vadd.f32 %v449_v38, %v921_v12 }
 0x2ab   :  { %v467_v40 = vsel %vm80_vm0, %v457_v39, 0.0 }
 0x2ac   :  { %468 = vadd.xlane.f32.xlu1 %v467_v40 }
 0x2b0   :  { %v452_v41 = vpop.f32.mrf.mxu1 }
 0x2b1   :  { %v458_v42 = vadd.f32 %v452_v41, %v930_v13 }
 0x2b3   :  { %v470_v43 = vsel %vm80_vm0, %v458_v42, 0.0 }
 0x2b4   :  { %471 = vadd.xlane.f32.xlu1 %v470_v43 }
 0x30f   :  { %v463_v51 = vpop.xlane.xlu0 %462 }
 0x310   :  { %v480_v52 = vmul.f32 %v1056_v50, %v463_v51 }
 0x312   :  { %v484_v53 = vsub.f32 %v455_v33, %v480_v52 }
 0x314   :  { %v488_v54 = vmul.f32 %v484_v53, %v484_v53 }
 0x316   :  { %v492_v55 = vsel %vm80_vm0, %v488_v54, 0.0 }
 0x317   :  { %493 = vadd.xlane.f32.xlu2 %v492_v55  ;;  %v466_v56 = vpop.xlane.xlu0 %465 }
 0x318   :  { %v481_v57 = vmul.f32 %v1056_v50, %v466_v56 }
 0x31a   :  { %v485_v58 = vsub.f32 %v456_v36, %v481_v57 }
 0x31c   :  { %v489_v59 = vmul.f32 %v485_v58, %v485_v58 }
 0x31e   :  { %v495_v60 = vsel %vm80_vm0, %v489_v59, 0.0 }
 0x31f   :  { %496 = vadd.xlane.f32.xlu2 %v495_v60  ;;  %v469_v61 = vpop.xlane.xlu1 %468 }
 0x320   :  { %v482_v62 = vmul.f32 %v1056_v50, %v469_v61 }
 0x322   :  { %v1063_v63 = vsub.f32 %v457_v39, %v482_v62 }
 0x324   :  { %v490_v0 = vmul.f32 %v1063_v63, %v1063_v63 }
 0x326   :  { %v498_v1 = vsel %vm80_vm0, %v490_v0, 0.0 }
 0x327   :  { %499 = vadd.xlane.f32.xlu0 %v498_v1  ;;  %v472_v2 = vpop.xlane.xlu1 %471 }
 0x328   :  { %v483_v3 = vmul.f32 %v1056_v50, %v472_v2 }
 0x32a   :  { %v1069_v4 = vsub.f32 %v458_v42, %v483_v3 }
 0x32c   :  { %v491_v6 = vmul.f32 %v1069_v4, %v1069_v4 }
 0x32e   :  { %v501_v7 = vsel %vm80_vm0, %v491_v6, 0.0 }
 0x32f   :  { %502 = vadd.xlane.f32.xlu1 %v501_v7 }
 0x38a   :  { %v494_v8 = vpop.xlane.xlu2 %493 }
 0x38b   :  { %v504_v9 = vmul.f32 %v494_v8, %v1056_v50 }
 0x38d   :  { %v508_v10 = vadd.f32 1e-05, %v504_v9 }
 0x38f   :  { %769 = vrsqrt.f32 %v508_v10  ;;  %vm518_vm3 = vweird.f32 %v508_v10 }
 0x392   :  { %v497_v14 = vpop.xlane.xlu2 %496 }
 0x393   :  { %v505_v15 = vmul.f32 %v497_v14, %v1056_v50 }
 0x395   :  { %v770_v16 = vpop.eup %769  ;;  %v509_v17 = vadd.f32 1e-05, %v505_v15 }
 0x396   :  { %v513_v18 = vmul.f32 %v770_v16, %v508_v10  ;;  %vm519_vm2 = vweird.f32 %v770_v16 }
 0x397   :  { %771 = vrsqrt.f32 %v509_v17  ;;  %vm520_vm4 = vmor %vm518_vm3, %vm519_vm2  ;;  %vm528_vm6 = vweird.f32 %v509_v17 }
 0x398   :  { %v514_v19 = vmul.f32 %v770_v16, %v513_v18 }
 0x39a   :  { %v515_v20 = vmul.f32 0.5, %v514_v19  ;;  %v500_v21 = vpop.xlane.xlu0 %499 }
 0x39b   :  { %v506_v22 = vmul.f32 %v500_v21, %v1056_v50 }
 0x39c   :  { %v516_v23 = vsub.f32 1.5, %v515_v20 }
 0x39d   :  { %v772_v24 = vpop.eup %771  ;;  %v510_v25 = vadd.f32 1e-05, %v506_v22 }
 0x39e   :  { %v517_v26 = vmul.f32 %v770_v16, %v516_v23  ;;  %v523_v27 = vmul.f32 %v772_v24, %v509_v17  ;;  %vm529_vm5 = vweird.f32 %v772_v24 }
 0x39f   :  { %773 = vrsqrt.f32 %v510_v25  ;;  %vm530_vm7 = vmor %vm528_vm6, %vm529_vm5  ;;  %vm538_vm9 = vweird.f32 %v510_v25 }
 0x3a0   :  { %v521_v29 = vsel %vm520_vm4, %v770_v16, %v517_v26  ;;  %v524_v30 = vmul.f32 %v772_v24, %v523_v27 }
 0x3a1   :  { %v552_v31 = vmul.f32 %v521_v29, %v484_v53 }
 0x3a2   :  { %v525_v33 = vmul.f32 0.5, %v524_v30  ;;  %v503_v34 = vpop.xlane.xlu1 %502 }
 0x3a3   :  { %v507_v35 = vmul.f32 %v503_v34, %v1056_v50  ;;  %v559_v36 = vmul.f32 %v747_v28, %v552_v31 }
 0x3a4   :  { %v526_v37 = vsub.f32 1.5, %v525_v33 }
 0x3a5   :  { %v774_v38 = vpop.eup %773  ;;  %v511_v39 = vadd.f32 1e-05, %v507_v35  ;;  %v566_v40 = vadd.f32 %v748_v32, %v559_v36 }
 0x3a6   :  { %v527_v41 = vmul.f32 %v772_v24, %v526_v37  ;;  %v533_v42 = vmul.f32 %v774_v38, %v510_v25  ;;  %vm539_vm8 = vweird.f32 %v774_v38 }
 0x3a7   :  { %775 = vrsqrt.f32 %v511_v39  ;;  %v570_v43 = vadd.f32 %v566_v40, %v903_v5  ;;  %vm540_vm10 = vmor %vm538_vm9, %vm539_vm8  ;;  %vm548_vm12 = vweird.f32 %v511_v39 }
 0x3a8   :  { %v531_v44 = vsel %vm530_vm7, %v772_v24, %v527_v41  ;;  %v534_v45 = vmul.f32 %v774_v38, %v533_v42 }
 0x3a9   :  { %v576_v46 = vsel %vm80_vm0, %v570_v43, 0.0  ;;  %v553_v47 = vmul.f32 %v531_v44, %v485_v58 }
 0x3aa   :  { %v535_v48 = vmul.f32 0.5, %v534_v45  ;;  %577 = vadd.xlane.f32.xlu2 %v576_v46 }
 0x3ab   :  { %v560_v49 = vmul.f32 %v747_v28, %v553_v47  ;;  %v749_v47 = vld [vmem:[%s1145_s7] ss:$0 sm:$0xff] }
 0x3ac   :  { %v536_v51 = vsub.f32 1.5, %v535_v48 }
 0x3ad   :  { %v776_v52 = vpop.eup %775  ;;  %v567_v53 = vadd.f32 %v748_v32, %v560_v49 }
 0x3ae   :  { %v537_v54 = vmul.f32 %v774_v38, %v536_v51  ;;  %v543_v55 = vmul.f32 %v776_v52, %v511_v39  ;;  %vm549_vm11 = vweird.f32 %v776_v52  ;;  %v750_v51 = vld [vmem:[%s1146_s8] ss:$0 sm:$0xff] }
 0x3af   :  { %v571_v56 = vadd.f32 %v567_v53, %v912_v11  ;;  %vm550_vm13 = vmor %vm548_vm12, %vm549_vm11 }
 0x3b0   :  { %v541_v57 = vsel %vm540_vm10, %v774_v38, %v537_v54  ;;  %v544_v5 = vmul.f32 %v776_v52, %v543_v55 }
 0x3b1   :  { %v579_v59 = vsel %vm80_vm0, %v571_v56, 0.0  ;;  %v554_v60 = vmul.f32 %v541_v57, %v1063_v63 }
 0x3b2   :  { %v545_v58 = vmul.f32 0.5, %v544_v5  ;;  %580 = vadd.xlane.f32.xlu0 %v579_v59 }
 0x3b3   :  { %v561_v61 = vmul.f32 %v747_v28, %v554_v60 }
 0x3b4   :  { %v546_v62 = vsub.f32 1.5, %v545_v58 }
 0x3b5   :  { %v568_v0 = vadd.f32 %v748_v32, %v561_v61 }
 0x3b6   :  { %v547_v1 = vmul.f32 %v776_v52, %v546_v62 }
 0x3b7   :  { %v572_v2 = vadd.f32 %v568_v0, %v921_v12 }
 0x3b8   :  { %v551_v3 = vsel %vm550_vm13, %v776_v52, %v547_v1 }
 0x3b9   :  { %v582_v11 = vsel %vm80_vm0, %v572_v2, 0.0  ;;  %v555_v6 = vmul.f32 %v551_v3, %v1069_v4 }
 0x3ba   :  { %583 = vadd.xlane.f32.xlu1 %v582_v11 }
 0x3bb   :  { %v562_v7 = vmul.f32 %v747_v28, %v555_v6 }
 0x3bd   :  { %v569_v8 = vadd.f32 %v748_v32, %v562_v7 }
 0x3bf   :  { %v573_v63 = vadd.f32 %v569_v8, %v930_v13 }
 0x3c1   :  { %v585_v9 = vsel %vm80_vm0, %v573_v63, 0.0 }
 0x3c2   :  { %586 = vadd.xlane.f32.xlu2 %v585_v9 }
 0x41d   :  { %v578_v10 = vpop.xlane.xlu2 %577 }
 0x41e   :  { %v588_v14 = vmul.f32 %v578_v10, %v1056_v50 }
 0x420   :  { %v592_v15 = vsub.f32 %v570_v43, %v588_v14 }
 0x422   :  { %v596_v16 = vmul.f32 %v592_v15, %v592_v15 }
 0x424   :  { %v600_v12 = vsel %vm80_vm0, %v596_v16, 0.0 }
 0x425   :  { %601 = vadd.xlane.f32.xlu0 %v600_v12  ;;  %v581_v17 = vpop.xlane.xlu0 %580 }
 0x426   :  { %v589_v18 = vmul.f32 %v581_v17, %v1056_v50 }
 0x428   :  { %v593_v4 = vsub.f32 %v571_v56, %v589_v18 }
 0x42a   :  { %v597_v19 = vmul.f32 %v593_v4, %v593_v4 }
 0x42c   :  { %v603_v20 = vsel %vm80_vm0, %v597_v19, 0.0 }
 0x42d   :  { %604 = vadd.xlane.f32.xlu1 %v603_v20  ;;  %v584_v13 = vpop.xlane.xlu1 %583 }
 0x42e   :  { %v590_v21 = vmul.f32 %v584_v13, %v1056_v50 }
 0x430   :  { %v1099_v22 = vsub.f32 %v572_v2, %v590_v21 }
 0x432   :  { %v598_v23 = vmul.f32 %v1099_v22, %v1099_v22 }
 0x434   :  { %v606_v24 = vsel %vm80_vm0, %v598_v23, 0.0 }
 0x435   :  { %v587_v25 = vpop.xlane.xlu2 %586  ;;  %607 = vadd.xlane.f32.xlu2 %v606_v24 }
 0x436   :  { %v591_v26 = vmul.f32 %v587_v25, %v1056_v50 }
 0x438   :  { %v1105_v27 = vsub.f32 %v573_v63, %v591_v26 }
 0x43a   :  { %v599_v28 = vmul.f32 %v1105_v27, %v1105_v27 }
 0x43c   :  { %v609_v29 = vsel %vm80_vm0, %v599_v28, 0.0 }
 0x43d   :  { %610 = vadd.xlane.f32.xlu0 %v609_v29 }
 0x498   :  { %v602_v30 = vpop.xlane.xlu0 %601 }
 0x499   :  { %v612_v31 = vmul.f32 %v602_v30, %v1056_v50 }
 0x49b   :  { %v616_v32 = vadd.f32 1e-05, %v612_v31 }
 0x49d   :  { %777 = vrsqrt.f32 %v616_v32  ;;  %vm626_vm15 = vweird.f32 %v616_v32 }
 0x4a0   :  { %v605_v33 = vpop.xlane.xlu1 %604 }
 0x4a1   :  { %v613_v34 = vmul.f32 %v605_v33, %v1056_v50 }
 0x4a3   :  { %v778_v35 = vpop.eup %777  ;;  %v617_v36 = vadd.f32 1e-05, %v613_v34 }
 0x4a4   :  { %v621_v37 = vmul.f32 %v778_v35, %v616_v32  ;;  %vm627_vm14 = vweird.f32 %v778_v35 }
 0x4a5   :  { %779 = vrsqrt.f32 %v617_v36  ;;  %vm628_vm1 = vmor %vm626_vm15, %vm627_vm14  ;;  %vm636_vm3 = vweird.f32 %v617_v36 }
 0x4a6   :  { %v622_v38 = vmul.f32 %v778_v35, %v621_v37 }
 0x4a8   :  { %v623_v39 = vmul.f32 0.5, %v622_v38  ;;  %v608_v40 = vpop.xlane.xlu2 %607 }
 0x4a9   :  { %v614_v41 = vmul.f32 %v608_v40, %v1056_v50 }
 0x4aa   :  { %v624_v42 = vsub.f32 1.5, %v623_v39 }
 0x4ab   :  { %v780_v43 = vpop.eup %779  ;;  %v618_v44 = vadd.f32 1e-05, %v614_v41 }
 0x4ac   :  { %v625_v45 = vmul.f32 %v778_v35, %v624_v42  ;;  %v631_v46 = vmul.f32 %v780_v43, %v617_v36  ;;  %vm637_vm2 = vweird.f32 %v780_v43 }
 0x4ad   :  { %781 = vrsqrt.f32 %v618_v44  ;;  %vm638_vm4 = vmor %vm636_vm3, %vm637_vm2  ;;  %vm646_vm6 = vweird.f32 %v618_v44 }
 0x4ae   :  { %v629_v48 = vsel %vm628_vm1, %v778_v35, %v625_v45  ;;  %v632_v49 = vmul.f32 %v780_v43, %v631_v46 }
 0x4af   :  { %v660_v52 = vmul.f32 %v629_v48, %v592_v15 }
 0x4b0   :  { %v633_v53 = vmul.f32 0.5, %v632_v49  ;;  %v611_v54 = vpop.xlane.xlu0 %610 }
 0x4b1   :  { %v667_v55 = vmul.f32 %v749_v47, %v660_v52  ;;  %v615_v56 = vmul.f32 %v611_v54, %v1056_v50 }
 0x4b2   :  { %v634_v57 = vsub.f32 1.5, %v633_v53 }
 0x4b3   :  { %v782_v5 = vpop.eup %781  ;;  %v674_v59 = vadd.f32 %v750_v51, %v667_v55  ;;  %v619_v60 = vadd.f32 1e-05, %v615_v56 }
 0x4b4   :  { %v635_v58 = vmul.f32 %v780_v43, %v634_v57  ;;  %v641_v61 = vmul.f32 %v782_v5, %v618_v44  ;;  %vm647_vm5 = vweird.f32 %v782_v5 }
 0x4b5   :  { %678 = vst.msk [vmem:[%s1147_s9] sm:$0xff] %vm80_vm0, %v674_v59  ;;  %783 = vrsqrt.f32 %v619_v60  ;;  %vm648_vm7 = vmor %vm646_vm6, %vm647_vm5  ;;  %vm656_vm9 = vweird.f32 %v619_v60 }
 0x4b6   :  { %v639_v62 = vsel %vm638_vm4, %v780_v43, %v635_v58  ;;  %v642_v0 = vmul.f32 %v782_v5, %v641_v61 }
 0x4b7   :  { %v661_v1 = vmul.f32 %v639_v62, %v593_v4 }
 0x4b8   :  { %v643_v2 = vmul.f32 0.5, %v642_v0 }
 0x4b9   :  { %v668_v50 = vmul.f32 %v749_v47, %v661_v1 }
 0x4ba   :  { %v644_v3 = vsub.f32 1.5, %v643_v2 }
 0x4bb   :  { %v784_v11 = vpop.eup %783  ;;  %v675_v6 = vadd.f32 %v750_v51, %v668_v50 }
 0x4bc   :  { %v645_v7 = vmul.f32 %v782_v5, %v644_v3  ;;  %v651_v8 = vmul.f32 %v784_v11, %v619_v60  ;;  %vm657_vm8 = vweird.f32 %v784_v11 }
 0x4bd   :  { %679 = vst.msk [vmem:[%s1147_s9 + $0x8] sm:$0xff] %vm80_vm0, %v675_v6  ;;  %vm658_vm10 = vmor %vm656_vm9, %vm657_vm8 }
 0x4be   :  { %v649_v63 = vsel %vm648_vm7, %v782_v5, %v645_v7  ;;  %v652_v9 = vmul.f32 %v784_v11, %v651_v8 }
 0x4bf   :  { %v662_v10 = vmul.f32 %v649_v63, %v1099_v22 }
 0x4c0   :  { %v653_v14 = vmul.f32 0.5, %v652_v9 }
 0x4c1   :  { %v669_v15 = vmul.f32 %v749_v47, %v662_v10 }
 0x4c2   :  { %v654_v16 = vsub.f32 1.5, %v653_v14 }
 0x4c3   :  { %v676_v12 = vadd.f32 %v750_v51, %v669_v15 }
 0x4c4   :  { %v655_v17 = vmul.f32 %v784_v11, %v654_v16 }
 0x4c5   :  { %680 = vst.msk [vmem:[%s1147_s9 + $0x10] sm:$0xff] %vm80_vm0, %v676_v12 }
 0x4c6   :  { %v659_v18 = vsel %vm658_vm10, %v784_v11, %v655_v17 }
 0x4c7   :  { %v663_v4 = vmul.f32 %v659_v18, %v1105_v27 }
 0x4c9   :  { %v670_v19 = vmul.f32 %v749_v47, %v663_v4 }
 0x4cb   :  { %v677_v20 = vadd.f32 %v750_v51, %v670_v19 }
 0x4cd   :  { %681 = vst.msk [vmem:[%s1147_s9 + $0x18] sm:$0xff] %vm80_vm0, %v677_v20 }
 0x4ce   :  { %686 = vsyncpa [#allocation3], 1 }
 0x4cf   :  { %687 = vsyncpa [#allocation5], 1 }

</bundles_post_ra>
